<compile_context>
chip_gen: v5e
topology: v5e:2x2
jax: 0.10.0
libtpu: 0.0.40
codegen_flags: <defaults>
</compile_context>

<pallas_src>
import jax
import jax.numpy as jnp
from jax.experimental import pallas as pl
from jax.experimental.pallas import tpu as pltpu


def temporal_encoder_kernel(
    x_ref,            # (1, F*N, in_dim)   F frames of tokens, flattened to rows
    w1_ref, b1_ref,   # encoder layer 1: (in_dim, dim), (1, dim)
    w2_ref, b2_ref,   # encoder layer 2: (dim, dim),    (1, dim)
    wc_ref, bc_ref,   # fused context_linear [prev|next]: (dim, 2*dim), (1, 2*dim)
    feat_ref,         # out: (F, N+2, dim)  rows 0/1 zero, rows 2: encoded tokens
    ctx_ref,          # out: (1, F, 2*dim)  per-frame [prev_ctx | next_ctx]
):
    F, n_plus_2, dim = feat_ref.shape
    N = n_plus_2 - 2

    x = x_ref[0]  # (F*N, in_dim)

    # --- DeepEncoder (2-layer MLP) on one big (F*N, in_dim) slab (MXU) ---
    h = jnp.dot(x, w1_ref[...], preferred_element_type=jnp.float32) + b1_ref[...]
    h = jnp.maximum(h, 0.0)
    f = jnp.dot(h, w2_ref[...], preferred_element_type=jnp.float32) + b2_ref[...]
    f3 = f.reshape(F, N, dim)

    # Write directly into the final (N+2)-token layout: rows 0/1 are the
    # context placeholders (zero here; filled by the wrapper), rows 2: = tokens.
    feat_ref[:, 0:2, :] = jnp.zeros((F, 2, dim), feat_ref.dtype)
    feat_ref[:, 2:, :] = f3.astype(feat_ref.dtype)

    # --- context path: mean over tokens FIRST (linearity), then one fused
    #     (F, dim) x (dim, 2*dim) projection for prev+next ---
    f_mean = jnp.mean(f3, axis=1)                                   # (F, dim)
    ctx = jnp.dot(f_mean, wc_ref[...],
                  preferred_element_type=jnp.float32) + bc_ref[...]  # (F, 2*dim)
    ctx_ref[0] = ctx.astype(ctx_ref.dtype)


def _pick_frames_per_step(BT, N, target_rows=512):
    """Largest divisor F of BT with F*N <= target_rows, preferring >=2 grid
    steps so the BT axis can shard across TensorCores (v7x megacore)."""
    candidates = [F for F in range(1, BT + 1)
                  if BT % F == 0 and F * N <= target_rows]
    if not candidates:
        return 1
    multi = [F for F in candidates if BT // F >= 2]
    return max(multi) if multi else max(candidates)


def temporal_encoder_forward(x, params, *, target_rows=512):
    """x: [B, T, N, in_dim] -> [B, T, N + 2, dim]"""
    B, T, N, in_dim = x.shape
    dim = params["w2"].shape[1]
    BT = B * T

    F = _pick_frames_per_step(BT, N, target_rows)
    G = BT // F

    # F frames per grid step, tokens flattened to rows for the matmuls.
    x_blocks = x.reshape(G, F * N, in_dim)

    # Fuse prev/next context projections into one weight / bias.
    wc = jnp.concatenate([params["wp"], params["wn"]], axis=1)   # (dim, 2*dim)
    bc = jnp.concatenate([params["bp"], params["bn"]], axis=1)   # (1, 2*dim)

    flops = (2 * BT * N * (in_dim * dim + dim * dim)      # encoder MLP
             + 2 * BT * dim * (2 * dim))                  # fused context proj
    bytes_accessed = 4 * (x.size
                          + BT * (N + 2) * dim            # feat output
                          + BT * 2 * dim                  # ctx output
                          + params["w1"].size + params["b1"].size
                          + params["w2"].size + params["b2"].size
                          + wc.size + bc.size)

    def full(shp):
        return pl.BlockSpec(shp, lambda i, _s=shp: tuple(0 for _ in _s))

    feat_pad, ctx = pl.pallas_call(
        temporal_encoder_kernel,
        out_shape=(
            jax.ShapeDtypeStruct((BT, N + 2, dim), jnp.float32),
            jax.ShapeDtypeStruct((G, F, 2 * dim), jnp.float32),
        ),
        grid_spec=pltpu.PrefetchScalarGridSpec(
            num_scalar_prefetch=0,
            grid=(G,),
            in_specs=[
                pl.BlockSpec((1, F * N, in_dim), lambda i: (i, 0, 0)),
                full((in_dim, dim)), full((1, dim)),
                full((dim, dim)),    full((1, dim)),
                full((dim, 2 * dim)), full((1, 2 * dim)),
            ],
            out_specs=[
                pl.BlockSpec((F, N + 2, dim), lambda i: (i, 0, 0)),
                pl.BlockSpec((1, F, 2 * dim), lambda i: (i, 0, 0)),
            ],
        ),
        compiler_params=pltpu.CompilerParams(
            dimension_semantics=("parallel",)),
        cost_estimate=pl.CostEstimate(
            flops=flops, transcendentals=0, bytes_accessed=bytes_accessed),
    )(
        x_blocks,
        params["w1"], params["b1"],
        params["w2"], params["b2"],
        wc, bc,
    )

    # build_context glue (tiny, O(B*T*dim)): temporal roll + boundary zero,
    # scattered into the context rows the kernel left zeroed.
    ctx = ctx.reshape(B, T, 2 * dim)
    cp = ctx[..., :dim]
    cn = ctx[..., dim:]
    f_prev = jnp.roll(cp, 1, axis=1).at[:, 0].set(0.0)
    f_next = jnp.roll(cn, -1, axis=1).at[:, -1].set(0.0)

    out = feat_pad.reshape(B, T, N + 2, dim)
    out = out.at[:, :, 0, :].set(f_prev)
    out = out.at[:, :, 1, :].set(f_next)
    return out


def init_params(key, in_dim, dim):
    ks = jax.random.split(key, 8)
    scale = 0.02
    return {
        "w1": scale * jax.random.normal(ks[0], (in_dim, dim), jnp.float32),
        "b1": scale * jax.random.normal(ks[1], (1, dim), jnp.float32),
        "w2": scale * jax.random.normal(ks[2], (dim, dim), jnp.float32),
        "b2": scale * jax.random.normal(ks[3], (1, dim), jnp.float32),
        "wp": scale * jax.random.normal(ks[4], (dim, dim), jnp.float32),
        "bp": scale * jax.random.normal(ks[5], (1, dim), jnp.float32),
        "wn": scale * jax.random.normal(ks[6], (dim, dim), jnp.float32),
        "bn": scale * jax.random.normal(ks[7], (1, dim), jnp.float32),
    }


if __name__ == "__main__":
    B, T, N, in_dim, dim = 2, 8, 16, 4, 32
    key = jax.random.PRNGKey(0)
    kx, kp = jax.random.split(key)
    x = jax.random.normal(kx, (B, T, N, in_dim), jnp.float32)
    params = init_params(kp, in_dim, dim)

    out = temporal_encoder_forward(x, params)
    out = jax.block_until_ready(out)
    assert out.shape == (B, T, N + 2, dim), out.shape

    # pure-JAX reference check (projection-after-mean is mathematically
    # identical to mean-after-projection; fp reassociation stays within tol)
    f_ref = (jnp.maximum(x @ params["w1"] + params["b1"][0], 0.0)
             @ params["w2"] + params["b2"][0])
    cp_ref = jnp.mean(f_ref @ params["wp"] + params["bp"][0], axis=-2)
    cn_ref = jnp.mean(f_ref @ params["wn"] + params["bn"][0], axis=-2)
    fp_ref = jnp.roll(cp_ref, 1, axis=1).at[:, 0].set(0.0)
    fn_ref = jnp.roll(cn_ref, -1, axis=1).at[:, -1].set(0.0)
    ref = jnp.concatenate(
        [fp_ref[:, :, None, :], fn_ref[:, :, None, :], f_ref], axis=-2)
    assert jnp.allclose(out, ref, atol=1e-5, rtol=1e-4), float(
        jnp.max(jnp.abs(out - ref)))

    print("KERNEL_OK")
</pallas_src>

<mosaic_0001>
module attributes {stable_mosaic.version = 11 : i64} {
  func.func @temporal_encoder_kernel(%arg0: i32, %arg1: memref<1x128x4xf32, #tpu.memory_space<vmem>>, %arg2: memref<4x32xf32, #tpu.memory_space<vmem>>, %arg3: memref<1x32xf32, #tpu.memory_space<vmem>>, %arg4: memref<32x32xf32, #tpu.memory_space<vmem>>, %arg5: memref<1x32xf32, #tpu.memory_space<vmem>>, %arg6: memref<32x64xf32, #tpu.memory_space<vmem>>, %arg7: memref<1x64xf32, #tpu.memory_space<vmem>>, %arg8: memref<8x18x32xf32, #tpu.memory_space<vmem>>, %arg9: memref<1x8x64xf32, #tpu.memory_space<vmem>>) attributes {dimension_semantics = [#tpu.dimension_semantics<parallel>], iteration_bounds = array<i64: 2>, scalar_prefetch = 0 : i64, scratch_operands = 0 : i64, tpu.core_type = #tpu.core_type<tc>, window_params = [{transform_indices = @transform_0, window_bounds = array<i64: 1, 128, 4>}, {pipeline_mode = #tpu.pipeline_mode<synchronous>, transform_indices = @transform_1, window_bounds = array<i64: 4, 32>}, {pipeline_mode = #tpu.pipeline_mode<synchronous>, transform_indices = @transform_2, window_bounds = array<i64: 1, 32>}, {pipeline_mode = #tpu.pipeline_mode<synchronous>, transform_indices = @transform_3, window_bounds = array<i64: 32, 32>}, {pipeline_mode = #tpu.pipeline_mode<synchronous>, transform_indices = @transform_4, window_bounds = array<i64: 1, 32>}, {pipeline_mode = #tpu.pipeline_mode<synchronous>, transform_indices = @transform_5, window_bounds = array<i64: 32, 64>}, {pipeline_mode = #tpu.pipeline_mode<synchronous>, transform_indices = @transform_6, window_bounds = array<i64: 1, 64>}, {transform_indices = @transform_7, window_bounds = array<i64: 8, 18, 32>}, {transform_indices = @transform_8, window_bounds = array<i64: 1, 8, 64>}]} {
    %c0 = arith.constant 0 : index
    %c0_0 = arith.constant 0 : index
    %c0_1 = arith.constant 0 : index
    %0 = vector.load %arg1[%c0, %c0_0, %c0_1] : memref<1x128x4xf32, #tpu.memory_space<vmem>>, vector<1x128x4xf32>
    %1 = vector.shape_cast %0 : vector<1x128x4xf32> to vector<128x4xf32>
    %c0_2 = arith.constant 0 : index
    %c0_3 = arith.constant 0 : index
    %2 = vector.load %arg2[%c0_2, %c0_3] : memref<4x32xf32, #tpu.memory_space<vmem>>, vector<4x32xf32>
    %cst = arith.constant dense<0.000000e+00> : vector<128x32xf32>
    %3 = tpu.matmul %1, %2, %cst {dimension_numbers = #tpu.dot_dimension_numbers<[1], [0], [0], [1], [0, 0, 1, 1], [], []>} : vector<128x4xf32>, vector<4x32xf32>, vector<128x32xf32> -> vector<128x32xf32>
    %c0_4 = arith.constant 0 : index
    %c0_5 = arith.constant 0 : index
    %4 = vector.load %arg3[%c0_4, %c0_5] : memref<1x32xf32, #tpu.memory_space<vmem>>, vector<1x32xf32>
    %5 = vector.broadcast %4 : vector<1x32xf32> to vector<128x32xf32>
    %6 = arith.addf %3, %5 : vector<128x32xf32>
    %cst_6 = arith.constant 0.000000e+00 : f32
    %7 = vector.broadcast %cst_6 : f32 to vector<128x32xf32>
    %8 = arith.maximumf %6, %7 : vector<128x32xf32>
    %c0_7 = arith.constant 0 : index
    %c0_8 = arith.constant 0 : index
    %9 = vector.load %arg4[%c0_7, %c0_8] : memref<32x32xf32, #tpu.memory_space<vmem>>, vector<32x32xf32>
    %cst_9 = arith.constant dense<0.000000e+00> : vector<128x32xf32>
    %10 = tpu.matmul %8, %9, %cst_9 {dimension_numbers = #tpu.dot_dimension_numbers<[1], [0], [0], [1], [0, 0, 1, 1], [], []>} : vector<128x32xf32>, vector<32x32xf32>, vector<128x32xf32> -> vector<128x32xf32>
    %c0_10 = arith.constant 0 : index
    %c0_11 = arith.constant 0 : index
    %11 = vector.load %arg5[%c0_10, %c0_11] : memref<1x32xf32, #tpu.memory_space<vmem>>, vector<1x32xf32>
    %12 = vector.broadcast %11 : vector<1x32xf32> to vector<128x32xf32>
    %13 = arith.addf %10, %12 : vector<128x32xf32>
    %14 = vector.shape_cast %13 : vector<128x32xf32> to vector<8x16x32xf32>
    %cst_12 = arith.constant 0.000000e+00 : f32
    %15 = vector.broadcast %cst_12 : f32 to vector<8x2x32xf32>
    %c0_13 = arith.constant 0 : index
    %c0_14 = arith.constant 0 : index
    %c0_15 = arith.constant 0 : index
    %16 = vector.load %arg8[%c0_13, %c0_14, %c0_15] : memref<8x18x32xf32, #tpu.memory_space<vmem>>, vector<8x2x32xf32>
    tpu.vector_store %arg8[%c0_13, %c0_14, %c0_15], %15 {strides = array<i32>} : memref<8x18x32xf32, #tpu.memory_space<vmem>>, vector<8x2x32xf32>,
    %c0_16 = arith.constant 0 : index
    %c2 = arith.constant 2 : index
    %c0_17 = arith.constant 0 : index
    %17 = vector.load %arg8[%c0_16, %c2, %c0_17] : memref<8x18x32xf32, #tpu.memory_space<vmem>>, vector<8x16x32xf32>
    tpu.vector_store %arg8[%c0_16, %c2, %c0_17], %14 {strides = array<i32>} : memref<8x18x32xf32, #tpu.memory_space<vmem>>, vector<8x16x32xf32>,
    %cst_18 = arith.constant dense<0.000000e+00> : vector<8x32xf32>
    %18 = vector.multi_reduction <add>, %14, %cst_18 [1] : vector<8x16x32xf32> to vector<8x32xf32>
    %cst_19 = arith.constant 1.600000e+01 : f32
    %19 = vector.broadcast %cst_19 : f32 to vector<8x32xf32>
    %20 = arith.divf %18, %19 : vector<8x32xf32>
    %c0_20 = arith.constant 0 : index
    %c0_21 = arith.constant 0 : index
    %21 = vector.load %arg6[%c0_20, %c0_21] : memref<32x64xf32, #tpu.memory_space<vmem>>, vector<32x64xf32>
    %cst_22 = arith.constant dense<0.000000e+00> : vector<8x64xf32>
    %22 = tpu.matmul %20, %21, %cst_22 {dimension_numbers = #tpu.dot_dimension_numbers<[1], [0], [0], [1], [0, 0, 1, 1], [], []>} : vector<8x32xf32>, vector<32x64xf32>, vector<8x64xf32> -> vector<8x64xf32>
    %c0_23 = arith.constant 0 : index
    %c0_24 = arith.constant 0 : index
    %23 = vector.load %arg7[%c0_23, %c0_24] : memref<1x64xf32, #tpu.memory_space<vmem>>, vector<1x64xf32>
    %24 = vector.broadcast %23 : vector<1x64xf32> to vector<8x64xf32>
    %25 = arith.addf %22, %24 : vector<8x64xf32>
    %c0_25 = arith.constant 0 : index
    %c0_26 = arith.constant 0 : index
    %c0_27 = arith.constant 0 : index
    %26 = vector.load %arg9[%c0_25, %c0_26, %c0_27] : memref<1x8x64xf32, #tpu.memory_space<vmem>>, vector<1x8x64xf32>
    %27 = vector.shape_cast %26 : vector<1x8x64xf32> to vector<8x64xf32>
    %28 = vector.shape_cast %25 : vector<8x64xf32> to vector<1x8x64xf32>
    tpu.vector_store %arg9[%c0_25, %c0_26, %c0_27], %28 {strides = array<i32>} : memref<1x8x64xf32, #tpu.memory_space<vmem>>, vector<1x8x64xf32>,
    return
  }
  func.func @transform_0(%arg0: i32) -> (i32, i32, i32) {
    %c0_i32 = arith.constant 0 : i32
    %c0_i32_0 = arith.constant 0 : i32
    %c0_i32_1 = arith.constant 0 : i32
    return %arg0, %c0_i32, %c0_i32_0 : i32, i32, i32
  }
  func.func @transform_1(%arg0: i32) -> (i32, i32) {
    %c0_i32 = arith.constant 0 : i32
    %c0_i32_0 = arith.constant 0 : i32
    %c0_i32_1 = arith.constant 0 : i32
    return %c0_i32, %c0_i32_0 : i32, i32
  }
  func.func @transform_2(%arg0: i32) -> (i32, i32) {
    %c0_i32 = arith.constant 0 : i32
    %c0_i32_0 = arith.constant 0 : i32
    %c0_i32_1 = arith.constant 0 : i32
    return %c0_i32, %c0_i32_0 : i32, i32
  }
  func.func @transform_3(%arg0: i32) -> (i32, i32) {
    %c0_i32 = arith.constant 0 : i32
    %c0_i32_0 = arith.constant 0 : i32
    %c0_i32_1 = arith.constant 0 : i32
    return %c0_i32, %c0_i32_0 : i32, i32
  }
  func.func @transform_4(%arg0: i32) -> (i32, i32) {
    %c0_i32 = arith.constant 0 : i32
    %c0_i32_0 = arith.constant 0 : i32
    %c0_i32_1 = arith.constant 0 : i32
    return %c0_i32, %c0_i32_0 : i32, i32
  }
  func.func @transform_5(%arg0: i32) -> (i32, i32) {
    %c0_i32 = arith.constant 0 : i32
    %c0_i32_0 = arith.constant 0 : i32
    %c0_i32_1 = arith.constant 0 : i32
    return %c0_i32, %c0_i32_0 : i32, i32
  }
  func.func @transform_6(%arg0: i32) -> (i32, i32) {
    %c0_i32 = arith.constant 0 : i32
    %c0_i32_0 = arith.constant 0 : i32
    %c0_i32_1 = arith.constant 0 : i32
    return %c0_i32, %c0_i32_0 : i32, i32
  }
  func.func @transform_7(%arg0: i32) -> (i32, i32, i32) {
    %c0_i32 = arith.constant 0 : i32
    %c0_i32_0 = arith.constant 0 : i32
    %c0_i32_1 = arith.constant 0 : i32
    return %arg0, %c0_i32, %c0_i32_0 : i32, i32, i32
  }
  func.func @transform_8(%arg0: i32) -> (i32, i32, i32) {
    %c0_i32 = arith.constant 0 : i32
    %c0_i32_0 = arith.constant 0 : i32
    %c0_i32_1 = arith.constant 0 : i32
    return %arg0, %c0_i32, %c0_i32_0 : i32, i32, i32
  }
}

</mosaic_0001>

<bundles_post_ra>
// kernel: tpu_custom_call.1
= control target key start
LH: loop header
LB: loop body
LE: loop exit
PB: predicated region body
PF: predicated region fallthrough
CT: control target
= control target key end

     0   :  { %14 = vsyncpa [#allocation3], 0  ;;  %s1372_s0 = inlined_call_operand.vmem [shape: f32[2,128,4], index: 0, kind: input, shape index: {}]   ;;  %s1373_s1 = inlined_call_operand.vmem [shape: f32[4,32], index: 1, kind: input, shape index: {}]   ;;  %s1374_s2 = inlined_call_operand.vmem [shape: f32[1,32], index: 2, kind: input, shape index: {}]   ;;  %s1375_s3 = inlined_call_operand.vmem [shape: f32[32,32], index: 3, kind: input, shape index: {}]   ;;  %s1376_s4 = inlined_call_operand.vmem [shape: f32[1,32], index: 4, kind: input, shape index: {}]   ;;  %s1377_s5 = inlined_call_operand.vmem [shape: f32[32,64], index: 5, kind: input, shape index: {}]   ;;  %s1378_s6 = inlined_call_operand.vmem [shape: f32[1,64], index: 6, kind: input, shape index: {}]   ;;  %s1379_s7 = inlined_call_operand.vmem [shape: f32[16,18,32], index: 7, kind: output, shape index: {0}]   ;;  %s1380_s8 = inlined_call_operand.hbm [shape: f32[2,8,64], index: 8, kind: output, shape index: {1}]  }
   0x1   :  { %16 = vsyncpa [#allocation3 + $0x1], 0  ;;  %s1085_s27 = smov 0   ;;  %s1087_s28 = smov 0  }
   0x2   :  { %s1089_s29 = smov 0   ;;  %s1091_s30 = smov 0  }
   0x3 LB: > { %s1106_s9 = sadd.s32 4294967295, %s1036_s30   ;;  %s874_s10 = sadd.s32 4294967294, %s1036_s30   ;;  %s1036_s30 = sphi %s1091_s30, %s1386_s30   ;;  %s1032_s29 = sphi %s1089_s29, %s1385_s29   ;;  %s1028_s28 = sphi %s1087_s28, %s1384_s28   ;;  %s1024_s27 = sphi %s1085_s27, %s1383_s27  }
   0x4   : > { %s1110_s11 = sadd.s32 1, %s1036_s30   ;;  %s207_s12 = sadd.s32 1, %s1032_s29 }
   0x5   : > { %s204_s13 = ssub.s32 %s1036_s30, %s1110_s11  ;;  %p217_p0 = scmp.ne.s32.totalorder %s1032_s29, %s1028_s28 }
   0x6   : > { %p205_p1 = scmp.eq.s32.totalorder %s204_s13, 0  ;;  %p218_p2 = scmp.eq.s32.totalorder %s1106_s9, 1 }
   0x7   : > { %p223_p3 = scmp.ne.s32.totalorder %s1028_s28, %s1024_s27  ;;  %p224_p4 = scmp.eq.s32.totalorder %s874_s10, 1 }
   0x8   : > { %s1121_s14 = scalar_select %p205_p1, %s1032_s29, %s207_s12  }
   0x9   : > { %p1123_p5 = por %p218_p2, %p217_p0  ;;  %p1127_p6 = por %p224_p4, %p223_p3 }
   0xa   : > { %p877_p7 = scmp.ge.s32.totalorder %s1036_s30, 1  ;;  %p268_p8 = scmp.lt.s32.totalorder %s1036_s30, 3 }
   0xc   : > { %p269_p9 = pnand %p877_p7, %p268_p8 }
   0xd   : > { %p308_p10 = scmp.lt.s32.totalorder (!%p269_p9), %s1106_s9, 1  ;;  %s1214_s21 = sshll.u32 (!%p269_p9), %s1106_s9, 3 }
   0xe   : > { %272 = sbr.rel (%p269_p9) target bundleno = 563 (0x233), region = 48  ;;  %p314_p11 = scmp.lt.s32.totalorder (!%p269_p9), %s1214_s21, 15 }
   0xf   : > { %s305_s24 = sand.u32 (!%p269_p9), 1, %s1028_s28   ;;  %s784_s10 = scalar_lea.hbm (!%p269_p9), %s1380_s8, %s1214_s21 }
  0x10   : > { %s878_s25 = sshll.u32 (!%p269_p9), %s305_s24, 3 }
  0x11   : > { %s307_s17 = scalar_lea.vmem (!%p269_p9), [#allocation2], %s878_s25  ;;  %s994_s25 = scalar_lea.hbm (!%p269_p9), %s1380_s8, 16 }
  0x12   : > { %s786_s18 = sshll.u32 (!%p269_p9), %s307_s17, 4  ;;  %s787_s18 = int_to_ptr.vmem [resolvable:$true] %s786_s18 }
  0x13   : > { %v336_v0 = vld [vmem:[%s1373_s1] sm:$0xf]  ;;  %vm390_vm0 = vcmask 1043456   ;;  %s309_s19 = scalar_select %p308_p10, %s1106_s9, 1  ;;  %vm341_vm1 = vcmask 31744   ;;  %v478_v11 = vld [vmem:[%s1375_s3 + $0x18] sm:$0xff] }
  0x14   : > { %883 = vmatpush.msk.msra.mxu0 %vm390_vm0, %v336_v0  ;;  %922 = vmatpush.msk.msra.mxu2 %vm390_vm0, %v336_v0  ;;  %v477_v18 = vld [vmem:[%s1375_s3 + $0x10] sm:$0xff]  ;;  %v476_v19 = vld [vmem:[%s1375_s3 + $0x8] sm:$0xff]  ;;  %v475_v20 = vld [vmem:[%s1375_s3] sm:$0xff]  ;;  %vm483_vm2 = vcmask 261120   ;;  %s315_s22 = scalar_select %p314_p11, %s1214_s21, 15  ;;  %vm597_vm3 = vcmask 254976  }
  0x15   : > { %s921_s20 = sshll.u32 %s309_s19, 7  ;;  %544 = vmatpush.msra.mxu1 %v478_v11  ;;  %923 = vmatpush.msra.mxu3 %v478_v11  ;;  %v1190_v21 = vld [vmem:[%s1374_s2] ss:$0 sm:$0xff]  ;;  %v1038_v62 = vmov 0.0   ;;  %vm725_vm5 = vcmask 1041409   ;;  %vm727_vm6 = vcmask 1042434  }
  0x16   : > { %s1141_s23 = scalar_lea.vmem %s1372_s0, %s921_s20  ;;  %vm729_vm7 = vcmask 1043459   ;;  %vm731_vm8 = vcmask 1044484   ;;  %vm733_vm9 = vcmask 1045509   ;;  %vm735_vm10 = vcmask 1046534   ;;  %s788_s19 = sshll.u32 %s784_s10, 4  ;;  %s789_s19 = int_to_ptr.hbm [resolvable:$true] %s788_s19 }
  0x17   : > { %v320_v1 = vld [vmem:[%s1141_s23] sm:$0xff]  ;;  %v321_v2 = vld [vmem:[%s1141_s23 + $0x8] sm:$0xff]  ;;  %v322_v3 = vld [vmem:[%s1141_s23 + $0x10] sm:$0xff]  ;;  %545 = vmatpush.msra.mxu1 %v477_v18  ;;  %924 = vmatpush.msra.mxu3 %v477_v18  ;;  %vm737_vm11 = vcmask 1047559   ;;  %vm761_vm12 = vcmask 523264   ;;  %s770_s20 = scalar_lea.sflag [#allocation3], %s305_s24 }
  0x18   : > { %884 = vmatmul.msk.f32.vlgmr.msra.gmra.mxu0 %vm341_vm1, %v320_v1  ;;  %v323_v4 = vld [vmem:[%s1141_s23 + $0x18] sm:$0xff]  ;;  %v324_v5 = vld [vmem:[%s1141_s23 + $0x20] sm:$0xff]  ;;  %v329_v6 = vld [vmem:[%s1141_s23 + $0x48] sm:$0xff] }
  0x19   : > { %893 = vmatmul.msk.f32.vlgmr.msra.gmra.mxu2 %vm341_vm1, %v329_v6  ;;  %v325_v7 = vld [vmem:[%s1141_s23 + $0x28] sm:$0xff]  ;;  %v330_v8 = vld [vmem:[%s1141_s23 + $0x50] sm:$0xff]  ;;  %v331_v10 = vld [vmem:[%s1141_s23 + $0x58] sm:$0xff]  ;;  %546 = vmatpush.msra.mxu1 %v476_v19 }
  0x1a   : > { %v326_v9 = vld [vmem:[%s1141_s23 + $0x30] sm:$0xff]  ;;  %v327_v12 = vld [vmem:[%s1141_s23 + $0x38] sm:$0xff]  ;;  %v332_v13 = vld [vmem:[%s1141_s23 + $0x60] sm:$0xff]  ;;  %925 = vmatpush.msra.mxu3 %v476_v19 }
  0x1b   : > { %v328_v14 = vld [vmem:[%s1141_s23 + $0x40] sm:$0xff]  ;;  %v333_v15 = vld [vmem:[%s1141_s23 + $0x68] sm:$0xff]  ;;  %v334_v16 = vld [vmem:[%s1141_s23 + $0x70] sm:$0xff]  ;;  %547 = vmatpush.msra.mxu1 %v475_v20 }
  0x1c   : > { %v335_v17 = vld [vmem:[%s1141_s23 + $0x78] sm:$0xff]  ;;  %926 = vmatpush.msra.mxu3 %v475_v20  ;;  %s927_s23 = smul.u32 24, %s315_s22  ;;  %s988_s22 = sshra.s32 %s789_s19, 4  ;;  %s989_s22 = int_to_ptr.hbm [resolvable:$true] %s988_s22 }
  0x1d   : > { %p995_p1 = scmp.lt.s32.totalorder %s989_s22, %s1380_s8 }
  0x1e   : > { %s1225_s9 = scalar_lea.vmem %s1379_s7, %s927_s23  ;;  %s990_s23 = scalar_lea.hbm %s989_s22, 8 }
  0x1f   : > { %598 = vst.msk [vmem:[%s1225_s9] sm:$0x3] %vm597_vm3, %v1038_v62  ;;  %p991_p12 = scmp.ne.s32.totalorder %s989_s22, %s990_s23  ;;  %p996_p2 = scmp.lt.s32.totalorder %s994_s25, %s990_s23 }
  0x20   : > { %885 = vmatmul.msk.f32.gmra.mxu0 %vm341_vm1, %v321_v2  ;;  %599 = vst.msk [vmem:[%s1225_s9 + $0x18] sm:$0x3] %vm597_vm3, %v1038_v62 }
  0x21   : > { %894 = vmatmul.msk.f32.gmra.mxu2 %vm341_vm1, %v330_v8  ;;  %600 = vst.msk [vmem:[%s1225_s9 + $0x30] sm:$0x3] %vm597_vm3, %v1038_v62  ;;  %p992_p13 = pnand %p991_p12, %p1123_p5  ;;  %p997_p3 = por %p996_p2, %p995_p1 }
  0x22   : > { %601 = vst.msk [vmem:[%s1225_s9 + $0x48] sm:$0x3] %vm597_vm3, %v1038_v62 }
  0x23   : > { %602 = vst.msk [vmem:[%s1225_s9 + $0x60] sm:$0x3] %vm597_vm3, %v1038_v62  ;;  %p993_p0 = pneg %p992_p13 }
  0x24   : > { %603 = vst.msk [vmem:[%s1225_s9 + $0x78] sm:$0x3] %vm597_vm3, %v1038_v62 }
  0x25   : > { %604 = vst.msk [vmem:[%s1225_s9 + $0x90] sm:$0x3] %vm597_vm3, %v1038_v62  ;;  %p998_p4 = pnand %p997_p3, %p993_p0 }
  0x26   : > { %605 = vst.msk [vmem:[%s1225_s9 + $0xa8] sm:$0x3] %vm597_vm3, %v1038_v62 }
  0x28   : > { %886 = vmatmul.msk.f32.gmra.mxu0 %vm341_vm1, %v322_v3 }
  0x29   : > { %895 = vmatmul.msk.f32.gmra.mxu2 %vm341_vm1, %v331_v10 }
  0x30   : > { %887 = vmatmul.msk.f32.gmra.mxu0 %vm341_vm1, %v323_v4 }
  0x31   : > { %896 = vmatmul.msk.f32.gmra.mxu2 %vm341_vm1, %v332_v13 }
  0x38   : > { %888 = vmatmul.msk.f32.gmra.mxu0 %vm341_vm1, %v324_v5 }
  0x39   : > { %897 = vmatmul.msk.f32.gmra.mxu2 %vm341_vm1, %v333_v15  ;;  %v1039_v15 = vmov 16.0  }
  0x3a   : > { %972 = vrcp.f32 %v1039_v15 }
  0x40   : > { %889 = vmatmul.msk.f32.gmra.mxu0 %vm341_vm1, %v325_v7  ;;  %v1245_v7 = vld [vmem:[%s1376_s4] ss:$0 sm:$0xff]  ;;  %v973_v19 = vpop.eup %972 }
  0x41   : > { %898 = vmatmul.msk.f32.gmra.mxu2 %vm341_vm1, %v334_v16  ;;  %vm699_vm4 = vweird.f32 %v973_v19 }
  0x48   : > { %890 = vmatmul.msk.f32.gmra.mxu0 %vm341_vm1, %v326_v9 }
  0x49   : > { %899 = vmatmul.msk.f32.gmra.mxu2 %vm341_vm1, %v335_v17 }
  0x50   : > { %891 = vmatmul.msk.f32.gmra.mxu0 %vm341_vm1, %v327_v12 }
  0x58   : > { %892 = vmatmul.msk.f32.gmra.mxu0 %vm341_vm1, %v328_v14 }
  0x95   : > { %v411_v22 = vpop.f32.mrf.mxu0 }
  0x96   : > { %v412_v23 = vadd.f32 %v1190_v21, %v411_v22 }
  0x98   : > { %v459_v24 = vmax.f32 %v412_v23, 0.0 }
  0x9a   : > { %900 = vmatmul.msk.f32.vlgmr.msra.gmra.mxu1 %vm483_vm2, %v459_v24 }
  0x9c   : > { %v438_v43 = vpop.f32.mrf.mxu2 }
  0x9d   : > { %v414_v25 = vpop.f32.mrf.mxu0  ;;  %v439_v51 = vadd.f32 %v1190_v21, %v438_v43 }
  0x9e   : > { %v415_v26 = vadd.f32 %v1190_v21, %v414_v25 }
  0x9f   : > { %v468_v52 = vmax.f32 %v439_v51, 0.0 }
  0xa0   : > { %v460_v27 = vmax.f32 %v415_v26, 0.0 }
  0xa2   : > { %901 = vmatmul.msk.f32.gmra.mxu1 %vm483_vm2, %v460_v27 }
  0xa4   : > { %v441_v48 = vpop.f32.mrf.mxu2 }
  0xa5   : > { %v417_v28 = vpop.f32.mrf.mxu0  ;;  %v442_v54 = vadd.f32 %v1190_v21, %v441_v48 }
  0xa6   : > { %v418_v29 = vadd.f32 %v1190_v21, %v417_v28 }
  0xa7   : > { %v469_v55 = vmax.f32 %v442_v54, 0.0 }
  0xa8   : > { %v461_v30 = vmax.f32 %v418_v29, 0.0 }
  0xaa   : > { %902 = vmatmul.msk.f32.gmra.mxu1 %vm483_vm2, %v461_v30 }
  0xac   : > { %v444_v53 = vpop.f32.mrf.mxu2 }
  0xad   : > { %v420_v31 = vpop.f32.mrf.mxu0  ;;  %v445_v57 = vadd.f32 %v1190_v21, %v444_v53 }
  0xae   : > { %v421_v32 = vadd.f32 %v1190_v21, %v420_v31 }
  0xaf   : > { %v470_v58 = vmax.f32 %v445_v57, 0.0 }
  0xb0   : > { %v462_v33 = vmax.f32 %v421_v32, 0.0 }
  0xb2   : > { %903 = vmatmul.msk.f32.gmra.mxu1 %vm483_vm2, %v462_v33 }
  0xb4   : > { %v447_v56 = vpop.f32.mrf.mxu2 }
  0xb5   : > { %v423_v34 = vpop.f32.mrf.mxu0  ;;  %v448_v59 = vadd.f32 %v1190_v21, %v447_v56 }
  0xb6   : > { %v424_v35 = vadd.f32 %v1190_v21, %v423_v34 }
  0xb7   : > { %v471_v61 = vmax.f32 %v448_v59, 0.0 }
  0xb8   : > { %v463_v36 = vmax.f32 %v424_v35, 0.0 }
  0xba   : > { %904 = vmatmul.msk.f32.gmra.mxu1 %vm483_vm2, %v463_v36 }
  0xbc   : > { %v450_v60 = vpop.f32.mrf.mxu2 }
  0xbd   : > { %v426_v37 = vpop.f32.mrf.mxu0  ;;  %v451_v63 = vadd.f32 %v1190_v21, %v450_v60 }
  0xbe   : > { %v427_v38 = vadd.f32 %v1190_v21, %v426_v37 }
  0xbf   : > { %v472_v1 = vmax.f32 %v451_v63, 0.0 }
  0xc0   : > { %v464_v39 = vmax.f32 %v427_v38, 0.0 }
  0xc2   : > { %905 = vmatmul.msk.f32.gmra.mxu1 %vm483_vm2, %v464_v39 }
  0xc4   : > { %v453_v0 = vpop.f32.mrf.mxu2 }
  0xc5   : > { %v429_v40 = vpop.f32.mrf.mxu0  ;;  %v454_v2 = vadd.f32 %v1190_v21, %v453_v0 }
  0xc6   : > { %v430_v41 = vadd.f32 %v1190_v21, %v429_v40 }
  0xc7   : > { %v473_v3 = vmax.f32 %v454_v2, 0.0 }
  0xc8   : > { %v465_v42 = vmax.f32 %v430_v41, 0.0 }
  0xca   : > { %906 = vmatmul.msk.f32.gmra.mxu1 %vm483_vm2, %v465_v42 }
  0xcc   : > { %v456_v4 = vpop.f32.mrf.mxu2 }
  0xcd   : > { %v432_v44 = vpop.f32.mrf.mxu0  ;;  %v457_v5 = vadd.f32 %v1190_v21, %v456_v4  ;;  %v712_v4 = vld [vmem:[%s1377_s5 + $0x18] sm:$0xff] }
  0xce   : > { %v433_v45 = vadd.f32 %v1190_v21, %v432_v44  ;;  %753 = vmatpush.msrb.mxu2 %v712_v4 }
  0xcf   : > { %v474_v6 = vmax.f32 %v457_v5, 0.0 }
  0xd0   : > { %v466_v46 = vmax.f32 %v433_v45, 0.0 }
  0xd2   : > { %907 = vmatmul.msk.f32.gmra.mxu1 %vm483_vm2, %v466_v46 }
  0xd5   : > { %v435_v47 = vpop.f32.mrf.mxu0 }
  0xd6   : > { %v436_v49 = vadd.f32 %v1190_v21, %v435_v47  ;;  %v695_v21 = vmul.f32 16.0, %v973_v19 }
  0xd8   : > { %v467_v50 = vmax.f32 %v436_v49, 0.0  ;;  %v696_v25 = vsub.f32 1.0, %v695_v21 }
  0xda   : > { %908 = vmatmul.msk.f32.vlgmr.msra.gmra.mxu3 %vm483_vm2, %v467_v50  ;;  %v697_v31 = vmul.f32 %v973_v19, %v696_v25 }
  0xdc   : > { %v698_v37 = vadd.f32 %v973_v19, %v697_v31 }
  0xde   : > { %v1266_v41 = vsel %vm699_vm4, %v973_v19, %v698_v37 }
  0xe2   : > { %909 = vmatmul.msk.f32.gmra.mxu3 %vm483_vm2, %v468_v52 }
  0xea   : > { %910 = vmatmul.msk.f32.gmra.mxu3 %vm483_vm2, %v469_v55 }
  0xf2   : > { %911 = vmatmul.msk.f32.gmra.mxu3 %vm483_vm2, %v470_v58 }
  0xfa   : > { %912 = vmatmul.msk.f32.gmra.mxu3 %vm483_vm2, %v471_v61 }
 0x102   : > { %913 = vmatmul.msk.f32.gmra.mxu3 %vm483_vm2, %v472_v1 }
 0x10a   : > { %914 = vmatmul.msk.f32.gmra.mxu3 %vm483_vm2, %v473_v3 }
 0x112   : > { %915 = vmatmul.msk.f32.gmra.mxu3 %vm483_vm2, %v474_v6 }
 0x117   : > { %v549_v8 = vpop.f32.mrf.mxu1 }
 0x118   : > { %v550_v9 = vadd.f32 %v1245_v7, %v549_v8 }
 0x11a   : > { %606 = vst.msk [vmem:[%s1225_s9 + $0x2] sm:$0xff] %vm483_vm2, %v550_v9  ;;  %v622_v12 = vsel %vm483_vm2, %v550_v9, 0.0 }
 0x11f   : > { %v552_v10 = vpop.f32.mrf.mxu1 }
 0x120   : > { %v553_v11 = vadd.f32 %v1245_v7, %v552_v10 }
 0x122   : > { %607 = vst.msk [vmem:[%s1225_s9 + $0xa] sm:$0xff] %vm483_vm2, %v553_v11  ;;  %v623_v13 = vsel %vm483_vm2, %v553_v11, 0.0 }
 0x123   : > { %v624_v14 = vadd.f32 %v623_v13, %v622_v12 }
 0x125   : > { %v625_v18 = vrot.slane %v624_v14, 4 }
 0x127   : > { %v555_v16 = vpop.f32.mrf.mxu1  ;;  %v626_v20 = vadd.f32 %v625_v18, %v624_v14 }
 0x128   : > { %v556_v17 = vadd.f32 %v1245_v7, %v555_v16  ;;  %v711_v16 = vld [vmem:[%s1377_s5 + $0x10] sm:$0xff] }
 0x129   : > { %v627_v24 = vrot.slane %v626_v20, 2  ;;  %754 = vmatpush.msrb.mxu2 %v711_v16 }
 0x12a   : > { %608 = vst.msk [vmem:[%s1225_s9 + $0x1a] sm:$0xff] %vm483_vm2, %v556_v17  ;;  %v631_v26 = vsel %vm483_vm2, %v556_v17, 0.0 }
 0x12b   : > { %v628_v29 = vadd.f32 %v627_v24, %v626_v20  ;;  %v710_v20 = vld [vmem:[%s1377_s5 + $0x8] sm:$0xff] }
 0x12c   : > { %755 = vmatpush.msrb.mxu2 %v710_v20 }
 0x12d   : > { %v629_v35 = vrot.slane %v628_v29, 1 }
 0x12f   : > { %v558_v22 = vpop.f32.mrf.mxu1  ;;  %v630_v39 = vadd.f32 %v629_v35, %v628_v29 }
 0x130   : > { %v559_v23 = vadd.f32 %v1245_v7, %v558_v22 }
 0x131   : > { %v701_v45 = vmul.f32 %v1266_v41, %v630_v39 }
 0x132   : > { %609 = vst.msk [vmem:[%s1225_s9 + $0x22] sm:$0xff] %vm483_vm2, %v559_v23  ;;  %v632_v27 = vsel %vm483_vm2, %v559_v23, 0.0 }
 0x133   : > { %v633_v28 = vadd.f32 %v632_v27, %v631_v26 }
 0x135   : > { %v634_v30 = vrot.slane %v633_v28, 4 }
 0x137   : > { %v635_v32 = vadd.f32 %v634_v30, %v633_v28  ;;  %v561_v33 = vpop.f32.mrf.mxu1  ;;  %v709_v28 = vld [vmem:[%s1377_s5] sm:$0xff] }
 0x138   : > { %v562_v34 = vadd.f32 %v1245_v7, %v561_v33  ;;  %756 = vmatpush.msrb.mxu2 %v709_v28 }
 0x139   : > { %v636_v36 = vrot.slane %v635_v32, 2 }
 0x13a   : > { %610 = vst.msk [vmem:[%s1225_s9 + $0x32] sm:$0xff] %vm483_vm2, %v562_v34  ;;  %v640_v47 = vsel %vm483_vm2, %v562_v34, 0.0 }
 0x13b   : > { %v637_v38 = vadd.f32 %v636_v36, %v635_v32 }
 0x13d   : > { %v638_v40 = vrot.slane %v637_v38, 1 }
 0x13f   : > { %v639_v42 = vadd.f32 %v638_v40, %v637_v38  ;;  %v564_v43 = vpop.f32.mrf.mxu1 }
 0x140   : > { %v565_v44 = vadd.f32 %v1245_v7, %v564_v43 }
 0x141   : > { %v702_v46 = vmul.f32 %v1266_v41, %v639_v42 }
 0x142   : > { %611 = vst.msk [vmem:[%s1225_s9 + $0x3a] sm:$0xff] %vm483_vm2, %v565_v44  ;;  %v641_v48 = vsel %vm483_vm2, %v565_v44, 0.0 }
 0x143   : > { %v726_v49 = vsel %vm725_vm5, %v702_v46, %v701_v45  ;;  %v642_v50 = vadd.f32 %v641_v48, %v640_v47 }
 0x145   : > { %v643_v51 = vrot.slane %v642_v50, 4 }
 0x147   : > { %v644_v52 = vadd.f32 %v643_v51, %v642_v50  ;;  %v567_v53 = vpop.f32.mrf.mxu1 }
 0x148   : > { %v568_v54 = vadd.f32 %v1245_v7, %v567_v53 }
 0x149   : > { %v645_v55 = vrot.slane %v644_v52, 2 }
 0x14a   : > { %612 = vst.msk [vmem:[%s1225_s9 + $0x4a] sm:$0xff] %vm483_vm2, %v568_v54  ;;  %v649_v62 = vsel %vm483_vm2, %v568_v54, 0.0 }
 0x14b   : > { %v646_v56 = vadd.f32 %v645_v55, %v644_v52 }
 0x14d   : > { %v647_v57 = vrot.slane %v646_v56, 1 }
 0x14f   : > { %v648_v58 = vadd.f32 %v647_v57, %v646_v56  ;;  %v570_v59 = vpop.f32.mrf.mxu1 }
 0x150   : > { %v571_v60 = vadd.f32 %v1245_v7, %v570_v59 }
 0x151   : > { %v703_v61 = vmul.f32 %v1266_v41, %v648_v58 }
 0x152   : > { %613 = vst.msk [vmem:[%s1225_s9 + $0x52] sm:$0xff] %vm483_vm2, %v571_v60  ;;  %v650_v63 = vsel %vm483_vm2, %v571_v60, 0.0 }
 0x153   : > { %v651_v0 = vadd.f32 %v650_v63, %v649_v62  ;;  %v728_v1 = vsel %vm727_vm6, %v703_v61, %v726_v49 }
 0x155   : > { %v652_v2 = vrot.slane %v651_v0, 4 }
 0x157   : > { %v653_v3 = vadd.f32 %v652_v2, %v651_v0 }
 0x159   : > { %v654_v5 = vrot.slane %v653_v3, 2 }
 0x15b   : > { %v655_v6 = vadd.f32 %v654_v5, %v653_v3 }
 0x15d   : > { %v656_v8 = vrot.slane %v655_v6, 1  ;;  %v573_v9 = vpop.f32.mrf.mxu3 }
 0x15e   : > { %v574_v10 = vadd.f32 %v1245_v7, %v573_v9 }
 0x15f   : > { %v657_v11 = vadd.f32 %v656_v8, %v655_v6 }
 0x160   : > { %614 = vst.msk [vmem:[%s1225_s9 + $0x62] sm:$0xff] %vm483_vm2, %v574_v10  ;;  %v658_v26 = vsel %vm483_vm2, %v574_v10, 0.0 }
 0x161   : > { %v704_v12 = vmul.f32 %v1266_v41, %v657_v11 }
 0x163   : > { %v1291_v13 = vsel %vm729_vm7, %v704_v12, %v728_v1  ;;  %v971_v12 = vld [vmem:[%s1378_s6] ss:$0 sm:$0xff] }
 0x165   : > { %v576_v14 = vpop.f32.mrf.mxu3 }
 0x166   : > { %v577_v15 = vadd.f32 %v1245_v7, %v576_v14 }
 0x168   : > { %615 = vst.msk [vmem:[%s1225_s9 + $0x6a] sm:$0xff] %vm483_vm2, %v577_v15  ;;  %v659_v24 = vsel %vm483_vm2, %v577_v15, 0.0 }
 0x169   : > { %v660_v29 = vadd.f32 %v659_v24, %v658_v26 }
 0x16b   : > { %v661_v36 = vrot.slane %v660_v29, 4 }
 0x16d   : > { %v579_v17 = vpop.f32.mrf.mxu3  ;;  %v662_v40 = vadd.f32 %v661_v36, %v660_v29 }
 0x16e   : > { %v580_v18 = vadd.f32 %v1245_v7, %v579_v17 }
 0x16f   : > { %v663_v45 = vrot.slane %v662_v40, 2 }
 0x170   : > { %616 = vst.msk [vmem:[%s1225_s9 + $0x7a] sm:$0xff] %vm483_vm2, %v580_v18  ;;  %v667_v30 = vsel %vm483_vm2, %v580_v18, 0.0 }
 0x171   : > { %v664_v49 = vadd.f32 %v663_v45, %v662_v40 }
 0x173   : > { %v665_v56 = vrot.slane %v664_v49, 1 }
 0x175   : > { %v582_v19 = vpop.f32.mrf.mxu3  ;;  %v666_v61 = vadd.f32 %v665_v56, %v664_v49 }
 0x176   : > { %v583_v21 = vadd.f32 %v1245_v7, %v582_v19 }
 0x178   : > { %617 = vst.msk [vmem:[%s1225_s9 + $0x82] sm:$0xff] %vm483_vm2, %v583_v21  ;;  %v668_v25 = vsel %vm483_vm2, %v583_v21, 0.0 }
 0x179   : > { %v669_v32 = vadd.f32 %v668_v25, %v667_v30 }
 0x17b   : > { %v670_v37 = vrot.slane %v669_v32, 4 }
 0x17d   : > { %v585_v22 = vpop.f32.mrf.mxu3  ;;  %v671_v43 = vadd.f32 %v670_v37, %v669_v32 }
 0x17e   : > { %v586_v23 = vadd.f32 %v1245_v7, %v585_v22 }
 0x17f   : > { %v672_v46 = vrot.slane %v671_v43, 2 }
 0x180   : > { %618 = vst.msk [vmem:[%s1225_s9 + $0x92] sm:$0xff] %vm483_vm2, %v586_v23  ;;  %v676_v33 = vsel %vm483_vm2, %v586_v23, 0.0 }
 0x181   : > { %v673_v51 = vadd.f32 %v672_v46, %v671_v43 }
 0x183   : > { %v674_v57 = vrot.slane %v673_v51, 1 }
 0x185   : > { %v588_v27 = vpop.f32.mrf.mxu3  ;;  %v675_v62 = vadd.f32 %v674_v57, %v673_v51 }
 0x186   : > { %v589_v31 = vadd.f32 %v1245_v7, %v588_v27 }
 0x187   : > { %v706_v2 = vmul.f32 %v1266_v41, %v675_v62 }
 0x188   : > { %619 = vst.msk [vmem:[%s1225_s9 + $0x9a] sm:$0xff] %vm483_vm2, %v589_v31  ;;  %v677_v34 = vsel %vm483_vm2, %v589_v31, 0.0 }
 0x189   : > { %v678_v35 = vadd.f32 %v677_v34, %v676_v33 }
 0x18b   : > { %v679_v38 = vrot.slane %v678_v35, 4 }
 0x18d   : > { %v591_v39 = vpop.f32.mrf.mxu3  ;;  %v680_v44 = vadd.f32 %v679_v38, %v678_v35 }
 0x18e   : > { %v592_v42 = vadd.f32 %v1245_v7, %v591_v39 }
 0x18f   : > { %v681_v47 = vrot.slane %v680_v44, 2 }
 0x190   : > { %620 = vst.msk [vmem:[%s1225_s9 + $0xaa] sm:$0xff] %vm483_vm2, %v592_v42  ;;  %v685_v53 = vsel %vm483_vm2, %v592_v42, 0.0 }
 0x191   : > { %v682_v52 = vadd.f32 %v681_v47, %v680_v44 }
 0x193   : > { %v683_v59 = vrot.slane %v682_v52, 1 }
 0x195   : > { %v594_v48 = vpop.f32.mrf.mxu3  ;;  %v684_v0 = vadd.f32 %v683_v59, %v682_v52 }
 0x196   : > { %v595_v50 = vadd.f32 %v1245_v7, %v594_v48  ;;  %v705_v7 = vmul.f32 %v1266_v41, %v666_v61 }
 0x197   : > { %v707_v4 = vmul.f32 %v1266_v41, %v684_v0 }
 0x198   : > { %621 = vst.msk [vmem:[%s1225_s9 + $0xb2] sm:$0xff] %vm483_vm2, %v595_v50  ;;  %v686_v54 = vsel %vm483_vm2, %v595_v50, 0.0  ;;  %v732_v6 = vsel %vm731_vm8, %v705_v7, %v1291_v13 }
 0x199   : > { %v687_v55 = vadd.f32 %v686_v54, %v685_v53  ;;  %v734_v9 = vsel %vm733_vm9, %v706_v2, %v732_v6 }
 0x19a   : > { %v736_v10 = vsel %vm735_vm10, %v707_v4, %v734_v9 }
 0x19b   : > { %v688_v58 = vrot.slane %v687_v55, 4 }
 0x19d   : > { %v689_v60 = vadd.f32 %v688_v58, %v687_v55 }
 0x19f   : > { %v690_v63 = vrot.slane %v689_v60, 2 }
 0x1a1   : > { %v691_v1 = vadd.f32 %v690_v63, %v689_v60 }
 0x1a3   : > { %v692_v3 = vrot.slane %v691_v1, 1 }
 0x1a5   : > { %v693_v5 = vadd.f32 %v692_v3, %v691_v1 }
 0x1a7   : > { %v708_v8 = vmul.f32 %v1266_v41, %v693_v5 }
 0x1a9   : > { %v738_v11 = vsel %vm737_vm11, %v708_v8, %v736_v10 }
 0x1aa   : > { %916 = vmatmul.msk.f32.vlgmr.msrb.gmra.mxu2 %vm483_vm2, %v738_v11 }
 0x22d   : > { %v758_v41 = vpop.f32.mrf.mxu2 }
 0x22e   : > { %v759_v13 = vadd.f32 %v971_v12, %v758_v41 }
 0x230   : > { %762 = vst.msk [vmem:[%s307_s17] sm:$0xff] %vm761_vm12, %v759_v13 }
 0x231   : > { %1001 = shalt.err (!%p998_p4)
}
 0x232   : > { %928 = dma.vmem_to_hbm [thread:$0]  (%p1123_p5), %s787_s18, 128, %s789_s19, %s770_s20  }
 0x233 PF: > { %p934_p7 = scmp.ge.s32.totalorder %s1036_s30, 2  ;;  %s809_s24 = sand.u32 1, %s1024_s27  }
 0x234   : > { %s810_s12 = scalar_lea.sflag [#allocation3], %s809_s24 }
 0x235   : > { %p931_p8 = pnand %p934_p7, %p1127_p6 }
 0x237   : > { %p932_p9 = pneg %p931_p8 }
 0x239   : > { %1019 = dma.done.wait (%p932_p9), %s810_s12, 128  }
 0x23a   : > { %1021 = vsyncadd (%p932_p9), %s810_s12, 4294967168  ;;  %p19_p10 = scmp.ge.s32.totalorder %s1110_s11, 4   ;;  %s1383_s27 = smov %s1028_s28 }
 0x23b   : > { %s1384_s28 = smov %s1032_s29  ;;  %s1385_s29 = smov %s1121_s14 }
 0x23c   : > { %s1386_s30 = smov %s1110_s11  ;;  %21 = sbr.rel (!%p19_p10) target bundleno = 3 (0x3), region = 95 }
 0x241   :  { %816 = vsyncpa [#allocation3], 1 }
 0x242   :  { %818 = vsyncpa [#allocation3 + $0x1], 1 }

</bundles_post_ra>
